<compile_context>
chip_gen: v7x
topology: tpu7x:2x2x1
jax: 0.10.0
libtpu: 0.0.40
codegen_flags: <defaults>
</compile_context>

<pallas_src>
import functools

import jax
import jax.numpy as jnp
from jax.experimental import pallas as pl
from jax.experimental.pallas import tpu as pltpu


def _round_up(x, m):
    return (x + m - 1) // m * m


def _mlp_kernel(x_ref, w1_ref, b1_ref, w2_ref, b2_ref, *rest,
                keep_threshold, keep_scale, training):
    if training:
        bits_ref, o_ref = rest
    else:
        (o_ref,) = rest

    k = pl.program_id(0)
    nk = pl.num_programs(0)

    @pl.when(k == 0)
    def _():
        o_ref[...] = jnp.zeros_like(o_ref)

    # fc1 tile: (Bp, R) @ (R, TK) + (1, TK). Weights stream as bf16, math f32.
    h = jnp.dot(x_ref[...], w1_ref[...].astype(jnp.float32),
                preferred_element_type=jnp.float32)
    h = h + b1_ref[...]

    # LeakyReLU(0.2)
    h = jnp.where(h >= 0.0, h, 0.2 * h)

    # Inverted dropout: keep iff bits >= p * 2^32 (pure integer compare),
    # kept units scaled by 1/(1-p).
    if training:
        keep = bits_ref[...] >= jnp.uint32(keep_threshold)
        h = jnp.where(keep, h * jnp.float32(keep_scale), 0.0)

    # fc2 partial: (Bp, TK) @ (TK, Ap), accumulated into the resident output.
    o_ref[...] += jnp.dot(h, w2_ref[...].astype(jnp.float32),
                          preferred_element_type=jnp.float32)

    @pl.when(k == nk - 1)
    def _():
        o_ref[...] = jnp.maximum(o_ref[...] + b2_ref[...], 0.0)


def mlp_1hl_dropout_r(x, w1, b1, w2, b2, *, drop_rate=0.5, training=False,
                      seed=0, tile_k=2048):
    """x: (B, R) f32; w1: (R, H); b1: (H,); w2: (H, A); b2: (A,)."""
    B, R = x.shape
    H = w1.shape[1]
    A = w2.shape[1]

    tile_k = min(tile_k, H)
    assert H % tile_k == 0

    B_pad = _round_up(B, 8)      # >= 8 sublanes
    A_pad = _round_up(A, 128)    # lane-dense W2 / output

    x_p = jnp.pad(x, ((0, B_pad - B), (0, 0))) if B_pad != B else x
    w2_p = jnp.pad(w2, ((0, 0), (0, A_pad - A))) if A_pad != A else w2
    b2_p = jnp.pad(b2, ((0, A_pad - A),)) if A_pad != A else b2

    # Stream the large weight matrices as bf16 (halves HBM traffic).
    w1_bf = w1.astype(jnp.bfloat16)
    w2_bf = w2_p.astype(jnp.bfloat16)
    b1_2d = b1.reshape(1, H)
    b2_2d = b2_p.reshape(1, A_pad)

    use_dropout = bool(training) and float(drop_rate) > 0.0
    keep_threshold = min(int(float(drop_rate) * (1 << 32)), (1 << 32) - 1)
    keep_scale = (1.0 / (1.0 - float(drop_rate))
                  if (use_dropout and drop_rate < 1.0) else 0.0)

    kernel = functools.partial(_mlp_kernel,
                               keep_threshold=keep_threshold,
                               keep_scale=keep_scale,
                               training=use_dropout)

    in_specs = [
        pl.BlockSpec((B_pad, R), lambda k: (0, 0)),        # x (resident)
        pl.BlockSpec((R, tile_k), lambda k: (0, k)),       # W1 tile (bf16)
        pl.BlockSpec((1, tile_k), lambda k: (0, k)),       # b1 tile
        pl.BlockSpec((tile_k, A_pad), lambda k: (k, 0)),   # W2 tile (bf16)
        pl.BlockSpec((1, A_pad), lambda k: (0, 0)),        # b2 (resident)
    ]
    inputs = [x_p, w1_bf, b1_2d, w2_bf, b2_2d]

    if use_dropout:
        bits = jax.random.bits(jax.random.PRNGKey(seed), (B_pad, H),
                               dtype=jnp.uint32)
        in_specs.append(pl.BlockSpec((B_pad, tile_k), lambda k: (0, k)))
        inputs.append(bits)

    grid_spec = pltpu.PrefetchScalarGridSpec(
        num_scalar_prefetch=0,
        grid=(H // tile_k,),
        in_specs=in_specs,
        out_specs=pl.BlockSpec((B_pad, A_pad), lambda k: (0, 0)),
    )

    out = pl.pallas_call(
        kernel,
        out_shape=jax.ShapeDtypeStruct((B_pad, A_pad), jnp.float32),
        grid_spec=grid_spec,
        compiler_params=pltpu.CompilerParams(
            dimension_semantics=("arbitrary",),   # reduction axis
            vmem_limit_bytes=32 * 1024 * 1024),   # explicit, safe on v5e/v6e/v7x
    )(*inputs)
    return out[:B, :A]


if __name__ == "__main__":
    # Shapes consistent with the module: opt.res_size=64, hidden=4096,
    # opt.att_size=32, batch=4, opt.drop_rate=0.5.
    B, RES, HID, ATT = 4, 64, 4096, 32
    drop_rate = 0.5

    key = jax.random.PRNGKey(0)
    kx, k1, k2 = jax.random.split(key, 3)

    x = jax.random.normal(kx, (B, RES), dtype=jnp.float32)

    # weights_init: Linear weight ~ N(0, 0.02), bias = 0. (PyTorch weight is
    # (out, in); we store the transpose (in, out) for the kernel layout.)
    w1 = 0.02 * jax.random.normal(k1, (RES, HID), dtype=jnp.float32)
    b1 = jnp.zeros((HID,), dtype=jnp.float32)
    w2 = 0.02 * jax.random.normal(k2, (HID, ATT), dtype=jnp.float32)
    b2 = jnp.zeros((ATT,), dtype=jnp.float32)

    # Kernel streams weights as bf16; reference uses the same bf16-rounded weights.
    w1_r = w1.astype(jnp.bfloat16).astype(jnp.float32)
    w2_r = w2.astype(jnp.bfloat16).astype(jnp.float32)
    h_ref = x @ w1_r + b1
    h_ref = jnp.where(h_ref >= 0.0, h_ref, 0.2 * h_ref)

    # ---- eval mode (dropout disabled): must match the pure-JAX reference ----
    out_eval = mlp_1hl_dropout_r(x, w1, b1, w2, b2,
                                 drop_rate=drop_rate, training=False)
    out_eval = jax.block_until_ready(out_eval)
    ref_eval = jnp.maximum(h_ref @ w2_r + b2, 0.0)
    assert out_eval.shape == (B, ATT)
    assert jnp.allclose(out_eval, ref_eval, atol=1e-3, rtol=1e-3)

    # ---- training mode: in-kernel dropout driven by deterministic bits ----
    seed = 123
    out_train = mlp_1hl_dropout_r(x, w1, b1, w2, b2, drop_rate=drop_rate,
                                  training=True, seed=seed)
    out_train = jax.block_until_ready(out_train)
    assert out_train.shape == (B, ATT)

    # Reference for the training path, reproducing the wrapper's bit stream.
    B_pad = _round_up(B, 8)
    bits = jax.random.bits(jax.random.PRNGKey(seed), (B_pad, HID),
                           dtype=jnp.uint32)[:B]
    keep = bits >= jnp.uint32(int(drop_rate * (1 << 32)))
    h_tr = jnp.where(keep, h_ref * (1.0 / (1.0 - drop_rate)), 0.0)
    ref_train = jnp.maximum(h_tr @ w2_r + b2, 0.0)
    assert jnp.allclose(out_train, ref_train, atol=1e-3, rtol=1e-3)

    print("KERNEL_OK")
</pallas_src>

<mosaic_0001>
module attributes {stable_mosaic.version = 11 : i64} {
  func.func @_mlp_kernel(%arg0: i32, %arg1: memref<8x64xf32, #tpu.memory_space<vmem>>, %arg2: memref<64x2048xbf16, #tpu.memory_space<vmem>>, %arg3: memref<1x2048xf32, #tpu.memory_space<vmem>>, %arg4: memref<2048x128xbf16, #tpu.memory_space<vmem>>, %arg5: memref<1x128xf32, #tpu.memory_space<vmem>>, %arg6: memref<8x128xf32, #tpu.memory_space<vmem>>) attributes {dimension_semantics = [#tpu.dimension_semantics<arbitrary>], iteration_bounds = array<i64: 2>, scalar_prefetch = 0 : i64, scratch_operands = 0 : i64, tpu.core_type = #tpu.core_type<tc>, window_params = [{pipeline_mode = #tpu.pipeline_mode<synchronous>, transform_indices = @transform_0, window_bounds = array<i64: 8, 64>}, {transform_indices = @transform_1, window_bounds = array<i64: 64, 2048>}, {transform_indices = @transform_2, window_bounds = array<i64: 1, 2048>}, {transform_indices = @transform_3, window_bounds = array<i64: 2048, 128>}, {pipeline_mode = #tpu.pipeline_mode<synchronous>, transform_indices = @transform_4, window_bounds = array<i64: 1, 128>}, {pipeline_mode = #tpu.pipeline_mode<synchronous>, transform_indices = @transform_5, window_bounds = array<i64: 8, 128>}]} {
    %c0_i32 = arith.constant 0 : i32
    %0 = arith.cmpi eq, %arg0, %c0_i32 : i32
    %1 = arith.extui %0 : i1 to i32
    %c0_i32_0 = arith.constant 0 : i32
    %2 = arith.cmpi ne, %1, %c0_i32_0 : i32
    scf.if %2 {
      %cst_16 = arith.constant 0.000000e+00 : f32
      %24 = vector.broadcast %cst_16 : f32 to vector<8x128xf32>
      %c0_17 = arith.constant 0 : index
      %c0_18 = arith.constant 0 : index
      %25 = vector.load %arg6[%c0_17, %c0_18] : memref<8x128xf32, #tpu.memory_space<vmem>>, vector<8x128xf32>
      tpu.vector_store %arg6[%c0_17, %c0_18], %24 {strides = array<i32>} : memref<8x128xf32, #tpu.memory_space<vmem>>, vector<8x128xf32>,
    } else {
    }
    %c0 = arith.constant 0 : index
    %c0_1 = arith.constant 0 : index
    %3 = vector.load %arg1[%c0, %c0_1] : memref<8x64xf32, #tpu.memory_space<vmem>>, vector<8x64xf32>
    %c0_2 = arith.constant 0 : index
    %c0_3 = arith.constant 0 : index
    %4 = vector.load %arg2[%c0_2, %c0_3] : memref<64x2048xbf16, #tpu.memory_space<vmem>>, vector<64x2048xbf16>
    %5 = arith.extf %4 : vector<64x2048xbf16> to vector<64x2048xf32>
    %cst = arith.constant dense<0.000000e+00> : vector<8x2048xf32>
    %6 = tpu.matmul %3, %5, %cst {dimension_numbers = #tpu.dot_dimension_numbers<[1], [0], [0], [1], [0, 0, 1, 1], [], []>} : vector<8x64xf32>, vector<64x2048xf32>, vector<8x2048xf32> -> vector<8x2048xf32>
    %c0_4 = arith.constant 0 : index
    %c0_5 = arith.constant 0 : index
    %7 = vector.load %arg3[%c0_4, %c0_5] : memref<1x2048xf32, #tpu.memory_space<vmem>>, vector<1x2048xf32>
    %8 = vector.broadcast %7 : vector<1x2048xf32> to vector<8x2048xf32>
    %9 = arith.addf %6, %8 : vector<8x2048xf32>
    %cst_6 = arith.constant 0.000000e+00 : f32
    %10 = vector.broadcast %cst_6 : f32 to vector<8x2048xf32>
    %11 = arith.cmpf oge, %9, %10 : vector<8x2048xf32>
    %cst_7 = arith.constant 2.000000e-01 : f32
    %12 = vector.broadcast %cst_7 : f32 to vector<8x2048xf32>
    %13 = arith.mulf %12, %9 : vector<8x2048xf32>
    %14 = arith.select %11, %9, %13 : vector<8x2048xi1>, vector<8x2048xf32>
    %c0_8 = arith.constant 0 : index
    %c0_9 = arith.constant 0 : index
    %15 = vector.load %arg6[%c0_8, %c0_9] : memref<8x128xf32, #tpu.memory_space<vmem>>, vector<8x128xf32>
    %c0_10 = arith.constant 0 : index
    %c0_11 = arith.constant 0 : index
    %16 = vector.load %arg4[%c0_10, %c0_11] : memref<2048x128xbf16, #tpu.memory_space<vmem>>, vector<2048x128xbf16>
    %17 = arith.extf %16 : vector<2048x128xbf16> to vector<2048x128xf32>
    %cst_12 = arith.constant dense<0.000000e+00> : vector<8x128xf32>
    %18 = tpu.matmul %14, %17, %cst_12 {dimension_numbers = #tpu.dot_dimension_numbers<[1], [0], [0], [1], [0, 0, 1, 1], [], []>} : vector<8x2048xf32>, vector<2048x128xf32>, vector<8x128xf32> -> vector<8x128xf32>
    %19 = arith.addf %15, %18 : vector<8x128xf32>
    %c0_13 = arith.constant 0 : index
    %c0_14 = arith.constant 0 : index
    %20 = vector.load %arg6[%c0_13, %c0_14] : memref<8x128xf32, #tpu.memory_space<vmem>>, vector<8x128xf32>
    tpu.vector_store %arg6[%c0_13, %c0_14], %19 {strides = array<i32>} : memref<8x128xf32, #tpu.memory_space<vmem>>, vector<8x128xf32>,
    %c1_i32 = arith.constant 1 : i32
    %21 = arith.cmpi eq, %arg0, %c1_i32 : i32
    %22 = arith.extui %21 : i1 to i32
    %c0_i32_15 = arith.constant 0 : i32
    %23 = arith.cmpi ne, %22, %c0_i32_15 : i32
    scf.if %23 {
      %c0_16 = arith.constant 0 : index
      %c0_17 = arith.constant 0 : index
      %24 = vector.load %arg6[%c0_16, %c0_17] : memref<8x128xf32, #tpu.memory_space<vmem>>, vector<8x128xf32>
      %c0_18 = arith.constant 0 : index
      %c0_19 = arith.constant 0 : index
      %25 = vector.load %arg5[%c0_18, %c0_19] : memref<1x128xf32, #tpu.memory_space<vmem>>, vector<1x128xf32>
      %26 = vector.broadcast %25 : vector<1x128xf32> to vector<8x128xf32>
      %27 = arith.addf %24, %26 : vector<8x128xf32>
      %cst_20 = arith.constant 0.000000e+00 : f32
      %28 = vector.broadcast %cst_20 : f32 to vector<8x128xf32>
      %29 = arith.maximumf %27, %28 : vector<8x128xf32>
      %c0_21 = arith.constant 0 : index
      %c0_22 = arith.constant 0 : index
      %30 = vector.load %arg6[%c0_21, %c0_22] : memref<8x128xf32, #tpu.memory_space<vmem>>, vector<8x128xf32>
      tpu.vector_store %arg6[%c0_21, %c0_22], %29 {strides = array<i32>} : memref<8x128xf32, #tpu.memory_space<vmem>>, vector<8x128xf32>,
    } else {
    }
    return
  }
  func.func @transform_0(%arg0: i32) -> (i32, i32) {
    %c0_i32 = arith.constant 0 : i32
    %c0_i32_0 = arith.constant 0 : i32
    %c0_i32_1 = arith.constant 0 : i32
    return %c0_i32, %c0_i32_0 : i32, i32
  }
  func.func @transform_1(%arg0: i32) -> (i32, i32) {
    %c0_i32 = arith.constant 0 : i32
    %c0_i32_0 = arith.constant 0 : i32
    return %c0_i32, %arg0 : i32, i32
  }
  func.func @transform_2(%arg0: i32) -> (i32, i32) {
    %c0_i32 = arith.constant 0 : i32
    %c0_i32_0 = arith.constant 0 : i32
    return %c0_i32, %arg0 : i32, i32
  }
  func.func @transform_3(%arg0: i32) -> (i32, i32) {
    %c0_i32 = arith.constant 0 : i32
    %c0_i32_0 = arith.constant 0 : i32
    return %arg0, %c0_i32 : i32, i32
  }
  func.func @transform_4(%arg0: i32) -> (i32, i32) {
    %c0_i32 = arith.constant 0 : i32
    %c0_i32_0 = arith.constant 0 : i32
    %c0_i32_1 = arith.constant 0 : i32
    return %c0_i32, %c0_i32_0 : i32, i32
  }
  func.func @transform_5(%arg0: i32) -> (i32, i32) {
    %c0_i32 = arith.constant 0 : i32
    %c0_i32_0 = arith.constant 0 : i32
    %c0_i32_1 = arith.constant 0 : i32
    return %c0_i32, %c0_i32_0 : i32, i32
  }
}

</mosaic_0001>

<bundles_post_ra>
// kernel: tpu_custom_call.1
= control target key start
LH: loop header
LB: loop body
LE: loop exit
PB: predicated region body
PF: predicated region fallthrough
CT: control target
= control target key end

     0   :  { %s4691_s0 = inlined_call_operand.hbm [shape: f32[8,64], index: 0, kind: input, shape index: {}]   ;;  %s4692_s1 = inlined_call_operand.hbm [shape: bf16[64,4096], index: 1, kind: input, shape index: {}]   ;;  %s4693_s2 = inlined_call_operand.hbm [shape: f32[1,4096], index: 2, kind: input, shape index: {}]   ;;  %s4694_s3 = inlined_call_operand.hbm [shape: bf16[4096,128], index: 3, kind: input, shape index: {}]   ;;  %s4695_s4 = inlined_call_operand.vmem [shape: f32[1,128], index: 4, kind: input, shape index: {}]   ;;  %s4696_s5 = inlined_call_operand.hbm [shape: f32[8,128], index: 5, kind: output, shape index: {}]  }
   0x1   :  { %4705 = sst [smem:[#allocation15_spill]] %s4692_s1 }
   0x2   :  { %10 = vsyncpa [#allocation3], 0 }
   0x3   :  { %11 = vsyncpa [#allocation6], 0 }
   0x4   :  { %13 = vsyncpa [#allocation6 + $0x1], 0 }
   0x5   :  { %14 = vsyncpa [#allocation9], 0 }
   0x6   :  { %16 = vsyncpa [#allocation9 + $0x1], 0 }
   0x7   :  { %17 = vsyncpa [#allocation4], 0  ;;  %s4135_s18 = smov 0   ;;  %s4137_s19 = smov 0  }
   0x8   :  { %s4139_s20 = smov 0   ;;  %s4141_s21 = smov 0  }
   0x9 LB: > { %s4156_s22 = sadd.s32 1, %s4092_s21   ;;  %s51_s23 = sadd.s32 1, %s4088_s20  ;;  %s4092_s21 = sphi %s4141_s21, %s4723_s21   ;;  %s4088_s20 = sphi %s4139_s20, %s4722_s20   ;;  %s4084_s19 = sphi %s4137_s19, %s4721_s19   ;;  %s4080_s18 = sphi %s4135_s18, %s4720_s18  }
   0xa   : > { %s48_s24 = ssub.s32 %s4092_s21, %s4156_s22  ;;  %p58_p0 = scmp.ne.s32.totalorder %s4088_s20, %s4084_s19 }
   0xb   : > { %p49_p1 = scmp.eq.s32.totalorder %s48_s24, 0  ;;  %p59_p2 = scmp.eq.s32.totalorder %s4092_s21, 0 }
   0xc   : > { %p3858_p3 = scmp.lt.s32.totalorder %s4092_s21, 2  ;;  %s196_s26 = sand.u32 1, %s4092_s21  }
   0xd   : > { %s4166_s25 = scalar_select %p49_p1, %s4088_s20, %s51_s23  }
   0xe   : > { %p60_p4 = por %p59_p2, %p58_p0  ;;  %s4170_s27 = sand.u32 1, %s4088_s20  }
   0xf   : > { %s2430_s28 = sshll.u32 %s4170_s27, 9  ;;  %s2459_s29 = sshll.u32 %s4092_s21, 10 }
  0x10   : > { %s4706_s1 = sld [smem:[#allocation15_spill]]  ;;  %s200_s8 = scalar_lea.vmem [#allocation5], %s2430_s28 }
  0x11   : > { %s207_s9 = sshll.u32 %s200_s8, 4  ;;  %p4179_p5 = pnand %p3858_p3, %p60_p4  ;;  %s4183_s9 = int_to_ptr.vmem [resolvable:$true] %s207_s9 }
  0x12   : > { %s4185_s11 = scalar_lea.sflag [#allocation6], %s196_s26 }
  0x13   : > { %s4707_s10 = scalar_select %p4179_p5, 1, 0 }
  0x14   : > { %p4191_p7 = pneg %p4179_p5 }
  0x16   : > { %s4177_s7 = scalar_lea.hbm %s4706_s1, %s2459_s29  ;;  %s3907_s16 = scalar_lea.hbm %s4706_s1, 16384 }
  0x17   : > { %s3902_s12 = scalar_lea.hbm %s4177_s7, 8192  ;;  %p3908_p10 = scmp.lt.u32.totalorder %s4177_s7, %s4706_s1 }
  0x18   : > { %p3903_p6 = scmp.ne.s32.totalorder %s4177_s7, %s3902_s12  ;;  %p3909_p11 = scmp.lt.u32.totalorder %s3907_s16, %s3902_s12 }
  0x19   : > { %s4708_s13 = scalar_select %p4191_p7, 1, 0 }
  0x1a   : > { %p3905_p8 = pnand %p4191_p7, %p3903_p6  ;;  %p3910_p12 = por %p3909_p11, %p3908_p10 }
  0x1b   : > { %p3911_p13 = scmp.lt.u32.totalorder %s3902_s12, %s4177_s7 }
  0x1c   : > { %p3906_p9 = pneg %p3905_p8 }
  0x1d   : > { %p3912_p0 = por %p3911_p13, %p3910_p12 }
  0x1f   : > { %p3913_p1 = pnand %p3912_p0, %p3906_p9 }
  0x21   : > { %3916 = shalt.err (!%p3913_p1)
}
  0x22   : > { %s3917_s24 = scalar_lea.vmem %s4183_s9, 8192  ;;  %s4094_s26 = smov [#allocation5]  }
  0x23   : > { %p3918_p2 = scmp.ne.s32.totalorder %s4183_s9, %s3917_s24  ;;  %s3922_s28 = sshll.u32 %s4094_s26, 4  ;;  %s3923_s28 = int_to_ptr.vmem [resolvable:$false] %s3922_s28 }
  0x24   : > { %s3924_s29 = scalar_lea.vmem %s3923_s28, 16384  ;;  %p3925_p6 = scmp.lt.s32.totalorder %s4183_s9, %s3923_s28 }
  0x25   : > { %p3920_p3 = pnand %p3918_p2, %p4191_p7  ;;  %p3926_p8 = scmp.lt.s32.totalorder %s3924_s29, %s3917_s24 }
  0x27   : > { %p3921_p4 = pneg %p3920_p3  ;;  %p3927_p10 = por %p3926_p8, %p3925_p6 }
  0x29   : > { %p3928_p11 = pnand %p3927_p10, %p3921_p4 }
  0x2b   : > { %3931 = shalt.err (!%p3928_p11)
}
  0x2c   : > { %s4095_s30 = smov 2048   ;;  %s4096_s6 = smov 1024  }
  0x2d   : > { %s4697_s8 = smov 64   ;;  %s4217_s12 = sadd.s32 4294967295, %s4092_s21  }
  0x2e   : > { %3850 = dma.hbm_to_vmem [thread:$0]  (!%p4179_p5), %s4177_s7, 8192, %s4183_s9, %s4185_s11, %s4095_s30, %s4096_s6, %s4697_s8  }
  0x2f   : > { %p64_p9 = scmp.ne.s32.totalorder %s4084_s19, %s4080_s18  ;;  %p4698_p12 = scmp.eq.s32.totalorder %s4217_s12, 0 }
  0x30   : > { %p2427_p13 = scmp.ge.s32.totalorder %s4092_s21, 1  ;;  %p169_p0 = scmp.lt.s32.totalorder %s4092_s21, 3 }
  0x31   : > { %p4226_p1 = por %p4698_p12, %p64_p9  ;;  %s4098_s7 = smov [#allocation2]  }
  0x32   : > { %p4231_p3 = pnand %p2427_p13, %p169_p0  ;;  %s182_s9 = sshll.u32 %s4098_s7, 4  ;;  %s183_s9 = int_to_ptr.vmem [resolvable:$true] %s182_s9 }
  0x33   : > { %s4709_s14 = scalar_select %p4226_p1, 1, 0 }
  0x34   : > { %s4710_s15 = scalar_select %p4231_p3, 1, 0 }
  0x35   : > { %s2433_s16 = sshll.u32 %s4170_s27, 4  ;;  %p3843_p4 = pneg %p4231_p3 }
  0x36   : > { %s2460_s18 = sshll.u32 %s4092_s21, 8  ;;  %s221_s28 = scalar_lea.vmem [#allocation7], %s2433_s16 }
  0x37   : > { %p4241_p6 = pnand %p3843_p4, %p4698_p12  ;;  %s4248_s26 = scalar_lea.hbm %s4693_s2, %s2460_s18 }
  0x38   : > { %s229_s29 = sshll.u32 %s221_s28, 4  ;;  %s3932_s7 = scalar_lea.hbm %s4691_s0, 128  ;;  %s4250_s29 = int_to_ptr.vmem [resolvable:$true] %s229_s29 }
  0x39   : > { %p3933_p8 = scmp.ne.s32.totalorder %s4691_s0, %s3932_s7  ;;  %p3934_p10 = pneg %p4241_p6 }
  0x3a   : > { %p3939_p13 = scmp.lt.u32.totalorder %s3932_s7, %s4691_s0 }
  0x3b   : > { %p3935_p11 = pnand %p3934_p10, %p3933_p8 }
  0x3d   : > { %p3936_p9 = pneg %p3935_p11 }
  0x3f   : > { %p3941_p0 = pnand %p3939_p13, %p3936_p9 }
  0x41   : > { %3944 = shalt.err (!%p3941_p0)
}
  0x42   : > { %s3945_s16 = scalar_lea.vmem %s183_s9, 128  ;;  %p3953_p1 = scmp.lt.s32.totalorder %s183_s9, %s183_s9 }
  0x43   : > { %p3946_p4 = scmp.ne.s32.totalorder %s183_s9, %s3945_s16  ;;  %p3954_p3 = scmp.lt.s32.totalorder %s3945_s16, %s3945_s16 }
  0x45   : > { %p3948_p2 = pnand %p3946_p4, %p3934_p10  ;;  %p3955_p5 = por %p3954_p3, %p3953_p1 }
  0x47   : > { %p3949_p12 = pneg %p3948_p2 }
  0x49   : > { %p3956_p7 = pnand %p3955_p5, %p3949_p12 }
  0x4b   : > { %3959 = shalt.err (!%p3956_p7)
}
  0x4c   : > { %3846 = dma.hbm_to_vmem [thread:$0]  (!%p4241_p6), %s4691_s0, 128, %s183_s9, [#allocation3]  }
  0x4d   : > { %s3960_s18 = scalar_lea.hbm %s4248_s26, 256  ;;  %p4712_p10 = scmp.ne.s32.totalorder %s4708_s13, 0 }
  0x4e   : > { %p3961_p8 = scmp.ne.s32.totalorder %s4248_s26, %s3960_s18  ;;  %s3965_s6 = scalar_lea.hbm %s4693_s2, 512 }
  0x4f   : > { %p3966_p5 = scmp.lt.u32.totalorder %s4248_s26, %s4693_s2  ;;  %p3967_p7 = scmp.lt.u32.totalorder %s3965_s6, %s3960_s18 }
  0x50   : > { %p3963_p2 = pnand %p3961_p8, %p4712_p10  ;;  %p3969_p1 = scmp.lt.u32.totalorder %s3960_s18, %s4248_s26 }
  0x51   : > { %p3968_p12 = por %p3967_p7, %p3966_p5 }
  0x52   : > { %p3964_p11 = pneg %p3963_p2 }
  0x53   : > { %p3970_p3 = por %p3969_p1, %p3968_p12 }
  0x55   : > { %p3971_p9 = pnand %p3970_p3, %p3964_p11 }
  0x57   : > { %3974 = shalt.err (!%p3971_p9)
}
  0x58   : > { %s3975_s9 = scalar_lea.vmem %s4250_s29, 256  ;;  %s4099_s23 = smov [#allocation7]  }
  0x59   : > { %p3976_p6 = scmp.ne.s32.totalorder %s4250_s29, %s3975_s9  ;;  %s3980_s24 = sshll.u32 %s4099_s23, 4  ;;  %s3981_s24 = int_to_ptr.vmem [resolvable:$false] %s3980_s24 }
  0x5a   : > { %s3982_s16 = scalar_lea.vmem %s3981_s24, 512  ;;  %p3983_p4 = scmp.lt.s32.totalorder %s4250_s29, %s3981_s24 }
  0x5b   : > { %p3978_p13 = pnand %p3976_p6, %p4712_p10  ;;  %p3984_p8 = scmp.lt.s32.totalorder %s3982_s16, %s3975_s9 }
  0x5d   : > { %p3979_p0 = pneg %p3978_p13  ;;  %p3985_p2 = por %p3984_p8, %p3983_p4 }
  0x5f   : > { %p3986_p5 = pnand %p3985_p2, %p3979_p0 }
  0x61   : > { %3989 = shalt.err (!%p3986_p5)
}
  0x62   : > { %p4713_p11 = scmp.ne.s32.totalorder %s4707_s10, 0  ;;  %s2436_s1 = sshll.u32 %s4170_s27, 10 }
  0x63   : > { %s2461_s8 = sshll.u32 %s4092_s21, 14  ;;  %s240_s6 = scalar_lea.vmem [#allocation8], %s2436_s1 }
  0x64   : > { %3853 = dma.hbm_to_vmem [thread:$0]  (!%p4713_p11), %s4248_s26, 256, %s4250_s29, %s4185_s11  }
  0x65   : > { %s4295_s30 = scalar_lea.hbm %s4694_s3, %s2461_s8  ;;  %s247_s7 = sshll.u32 %s240_s6, 4  ;;  %s4297_s7 = int_to_ptr.vmem [resolvable:$true] %s247_s7 }
  0x66   : > { %s237_s17 = scalar_lea.sflag [#allocation9], %s4170_s27  ;;  %s3990_s9 = scalar_lea.hbm %s4295_s30, 16384 }
  0x67   : > { %p3991_p7 = scmp.ne.s32.totalorder %s4295_s30, %s3990_s9  ;;  %s3995_s26 = scalar_lea.hbm %s4694_s3, 32768 }
  0x68   : > { %p3996_p3 = scmp.lt.u32.totalorder %s4295_s30, %s4694_s3  ;;  %p3997_p9 = scmp.lt.u32.totalorder %s3995_s26, %s3990_s9 }
  0x69   : > { %p3993_p12 = pnand %p3991_p7, %p4712_p10  ;;  %p3999_p13 = scmp.lt.u32.totalorder %s3990_s9, %s4295_s30 }
  0x6a   : > { %p3998_p6 = por %p3997_p9, %p3996_p3 }
  0x6b   : > { %p3994_p1 = pneg %p3993_p12 }
  0x6c   : > { %p4000_p0 = por %p3999_p13, %p3998_p6 }
  0x6e   : > { %p4001_p4 = pnand %p4000_p0, %p3994_p1 }
  0x70   : > { %4004 = shalt.err (!%p4001_p4)
}
  0x71   : > { %s4005_s24 = scalar_lea.vmem %s4297_s7, 16384  ;;  %s4100_s16 = smov [#allocation8]  }
  0x72   : > { %p4006_p8 = scmp.ne.s32.totalorder %s4297_s7, %s4005_s24  ;;  %s4010_s1 = sshll.u32 %s4100_s16, 4  ;;  %s4011_s1 = int_to_ptr.vmem [resolvable:$false] %s4010_s1 }
  0x73   : > { %s4012_s8 = scalar_lea.vmem %s4011_s1, 32768  ;;  %p4013_p7 = scmp.lt.s32.totalorder %s4297_s7, %s4011_s1 }
  0x74   : > { %p4008_p2 = pnand %p4006_p8, %p4712_p10  ;;  %p4014_p12 = scmp.lt.s32.totalorder %s4012_s8, %s4005_s24 }
  0x76   : > { %p4009_p5 = pneg %p4008_p2  ;;  %p4015_p3 = por %p4014_p12, %p4013_p7 }
  0x78   : > { %p4016_p9 = pnand %p4015_p3, %p4009_p5 }
  0x7a   : > { %4019 = shalt.err (!%p4016_p9)
}
  0x7b   : > { %s4101_s18 = smov 4   ;;  %s4714_s28 = smov 64  }
  0x7c   : > { %3856 = dma.hbm_to_vmem [thread:$0]  (!%p4713_p11), %s4295_s30, 16384, %s4297_s7, %s237_s17, %s4714_s28, %s4714_s28, %s4101_s18  }
  0x7d   : > { %p4715_p10 = scmp.ne.s32.totalorder %s4710_s15, 0 }
  0x7e   : > { %p4716_p1 = scmp.eq.s32.totalorder (!%p4715_p10), %s4217_s12, 0 }
  0x7f   : > { %259 = sbr.rel (%p4715_p10) target bundleno = 747 (0x2eb), region = 40 }
  0x86   : > { %4063 = dma.done.wait (%p4716_p1), [#allocation3], 128   ;;  %p4717_p6 = pmov %p4716_p1 }
  0x87   : > { %s265_s10 = sand.u32 1, %s4217_s12   ;;  %s267_s13 = sand.u32 1, %s4084_s19  }
  0x88   : > { %4065 = vsyncadd (%p4717_p6), [#allocation3], 4294967168  ;;  %s2441_s6 = sshll.u32 %s267_s13, 9  ;;  %s266_s9 = scalar_lea.sflag [#allocation6], %s265_s10 }
  0x89   : > { %s4333_s27 = scalar_lea.vmem [#allocation5], %s2441_s6  ;;  %p4718_p13 = scmp.ne.s32.totalorder %s4709_s14, 0 }
  0x8b   : > { %4067 = dma.done.wait (%p4718_p13), %s266_s9, 8448  }
  0x8c   : > { %4069 = vsyncadd (%p4718_p13), %s266_s9, 4294958848  ;;  %s2442_s15 = sshll.u32 %s267_s13, 4  ;;  %s2443_s30 = sshll.u32 %s267_s13, 10 }
  0x8d   : > { %s4339_s7 = scalar_lea.vmem [#allocation7], %s2442_s15  ;;  %s284_s17 = scalar_lea.sflag [#allocation9], %s267_s13 }
  0x8e   : > { %s4341_s21 = scalar_lea.vmem [#allocation8], %s2443_s30 }
  0x8f   : > { %4071 = dma.done.wait (%p4718_p13), %s284_s17, 16384  }
  0x90   : > { %4073 = vsyncadd (%p4718_p13), %s284_s17, 4294950912  ;;  %p4719_p11 = scmp.ne.s32.totalorder %s4217_s12, 0 }
  0x91   : > { %v4102_v0 = vmov (!%p4719_p11), 0.0  }
  0x92   : > { %325 = sbr.rel (%p4719_p11) target bundleno = 153 (0x99), region = 60  ;;  %326 = vst [vmem:[#allocation10] sm:$0xff] (!%p4719_p11), %v4102_v0 }
  0x99 PF: > { %v328_v1 = vld [vmem:[%s4333_s27] sm:$0xff]  ;;  %v329_v3 = vld [vmem:[%s4333_s27 + $0x8] sm:$0xff]  ;;  %v4103_v9 = vmov 0.0   ;;  %v330_v32 = vld [vmem:[%s4333_s27 + $0x10] sm:$0xff]  ;;  %vm604_vm0 = vcmask 523264   ;;  %p2453_p0 = scmp.ne.s32.totalorder %s4217_s12, 1 }
  0x9a   : > { %v336_v2 = vld [vmem:[%s4333_s27 + $0x40] sm:$0xff]  ;;  %v337_v5 = vld [vmem:[%s4333_s27 + $0x48] sm:$0xff]  ;;  %672 = vmatprep.mubr.f32.mxu0 %v4103_v9  ;;  %743 = vmatprep.mubr.f32.mxu1 %v4103_v9  ;;  %v338_v33 = vld [vmem:[%s4333_s27 + $0x50] sm:$0xff] }
  0x9b   : > { %v3765_v4 = vcombine.high %v328_v1, %v336_v2  ;;  %v3766_v6 = vcombine.low %v328_v1, %v336_v2  ;;  %v344_v7 = vld [vmem:[%s4333_s27 + $0x80] sm:$0xff]  ;;  %v3773_v10 = vcombine.high %v329_v3, %v337_v5  ;;  %v3774_v11 = vcombine.low %v329_v3, %v337_v5  ;;  %v345_v13 = vld [vmem:[%s4333_s27 + $0x88] sm:$0xff]  ;;  %v331_v34 = vld [vmem:[%s4333_s27 + $0x18] sm:$0xff] }
  0x9c   : > { %v352_v8 = vld [vmem:[%s4333_s27 + $0xc0] sm:$0xff]  ;;  %v353_v14 = vld [vmem:[%s4333_s27 + $0xc8] sm:$0xff]  ;;  %v339_v35 = vld [vmem:[%s4333_s27 + $0x58] sm:$0xff]  ;;  %v3781_v38 = vcombine.high %v330_v32, %v338_v33  ;;  %v3782_v45 = vcombine.low %v330_v32, %v338_v33 }
  0x9d   : > { %v3767_v12 = vcombine.high %v344_v7, %v352_v8  ;;  %v360_v15 = vld [vmem:[%s4333_s27 + $0x100] sm:$0xff]  ;;  %3382 = vmatprep.subr.bf16.mxu0 %v3765_v4  ;;  %v3775_v16 = vcombine.high %v345_v13, %v353_v14  ;;  %v361_v18 = vld [vmem:[%s4333_s27 + $0x108] sm:$0xff]  ;;  %3398 = vmatprep.subr.bf16.mxu1 %v3773_v10  ;;  %v3768_v20 = vcombine.low %v344_v7, %v352_v8  ;;  %v346_v40 = vld [vmem:[%s4333_s27 + $0x90] sm:$0xff] }
  0x9e   : > { %v368_v17 = vld [vmem:[%s4333_s27 + $0x140] sm:$0xff]  ;;  %v369_v19 = vld [vmem:[%s4333_s27 + $0x148] sm:$0xff]  ;;  %3384 = vmatpush1.bf16.msra.mxu0 %v3766_v6  ;;  %3400 = vmatpush1.bf16.msra.mxu1 %v3774_v11  ;;  %v3776_v21 = vcombine.low %v345_v13, %v353_v14  ;;  %v3789_v39 = vcombine.high %v331_v34, %v339_v35  ;;  %v354_v41 = vld [vmem:[%s4333_s27 + $0xd0] sm:$0xff]  ;;  %v3790_v46 = vcombine.low %v331_v34, %v339_v35 }
  0x9f   : > { %3386 = vmatprep.subr.bf16.mxu0 %v3767_v12  ;;  %v3769_v22 = vcombine.high %v360_v15, %v368_v17  ;;  %3402 = vmatprep.subr.bf16.mxu1 %v3775_v16  ;;  %v3777_v23 = vcombine.high %v361_v18, %v369_v19  ;;  %v376_v24 = vld [vmem:[%s4333_s27 + $0x180] sm:$0xff]  ;;  %v377_v26 = vld [vmem:[%s4333_s27 + $0x188] sm:$0xff]  ;;  %v3770_v28 = vcombine.low %v360_v15, %v368_v17  ;;  %v347_v42 = vld [vmem:[%s4333_s27 + $0x98] sm:$0xff] }
  0xa0   : > { %v384_v25 = vld [vmem:[%s4333_s27 + $0x1c0] sm:$0xff]  ;;  %v385_v27 = vld [vmem:[%s4333_s27 + $0x1c8] sm:$0xff]  ;;  %v3778_v29 = vcombine.low %v361_v18, %v369_v19  ;;  %v355_v43 = vld [vmem:[%s4333_s27 + $0xd8] sm:$0xff]  ;;  %v3783_v47 = vcombine.high %v346_v40, %v354_v41  ;;  %v3784_v53 = vcombine.low %v346_v40, %v354_v41 }
  0xa1   : > { %v3771_v30 = vcombine.high %v376_v24, %v384_v25  ;;  %v3779_v31 = vcombine.high %v377_v26, %v385_v27  ;;  %v3772_v36 = vcombine.low %v376_v24, %v384_v25  ;;  %v3780_v37 = vcombine.low %v377_v26, %v385_v27  ;;  %v4375_v44 = vld [vmem:[#allocation2] sm:$0xff]  ;;  %v362_v49 = vld [vmem:[%s4333_s27 + $0x110] sm:$0xff]  ;;  %v332_v1 = vld [vmem:[%s4333_s27 + $0x20] sm:$0xff] }
  0xa2   : > { %3388 = vmatpush1.bf16.msra.mxu0 %v3768_v20  ;;  %3404 = vmatpush1.bf16.msra.mxu1 %v3776_v21  ;;  %v3791_v48 = vcombine.high %v347_v42, %v355_v43  ;;  %v370_v50 = vld [vmem:[%s4333_s27 + $0x150] sm:$0xff]  ;;  %v363_v51 = vld [vmem:[%s4333_s27 + $0x118] sm:$0xff]  ;;  %v3792_v54 = vcombine.low %v347_v42, %v355_v43  ;;  %v340_v2 = vld [vmem:[%s4333_s27 + $0x60] sm:$0xff] }
  0xa3   : > { %3390 = vmatprep.subr.bf16.mxu0 %v3769_v22  ;;  %3406 = vmatprep.subr.bf16.mxu1 %v3777_v23  ;;  %v371_v52 = vld [vmem:[%s4333_s27 + $0x158] sm:$0xff]  ;;  %v3785_v55 = vcombine.high %v362_v49, %v370_v50  ;;  %v378_v57 = vld [vmem:[%s4333_s27 + $0x190] sm:$0xff]  ;;  %v3786_v61 = vcombine.low %v362_v49, %v370_v50  ;;  %v333_v3 = vld [vmem:[%s4333_s27 + $0x28] sm:$0xff]  ;;  %v3797_v7 = vcombine.high %v332_v1, %v340_v2 }
  0xa4   : > { %v3793_v56 = vcombine.high %v363_v51, %v371_v52  ;;  %v386_v58 = vld [vmem:[%s4333_s27 + $0x1d0] sm:$0xff]  ;;  %v379_v59 = vld [vmem:[%s4333_s27 + $0x198] sm:$0xff]  ;;  %v3794_v62 = vcombine.low %v363_v51, %v371_v52  ;;  %v341_v4 = vld [vmem:[%s4333_s27 + $0x68] sm:$0xff]  ;;  %v3798_v14 = vcombine.low %v332_v1, %v340_v2 }
  0xa5   : > { %v387_v60 = vld [vmem:[%s4333_s27 + $0x1d8] sm:$0xff]  ;;  %v3787_v63 = vcombine.high %v378_v57, %v386_v58  ;;  %v3788_v5 = vcombine.low %v378_v57, %v386_v58  ;;  %v3805_v8 = vcombine.high %v333_v3, %v341_v4  ;;  %v348_v10 = vld [vmem:[%s4333_s27 + $0xa0] sm:$0xff]  ;;  %v349_v12 = vld [vmem:[%s4333_s27 + $0xa8] sm:$0xff]  ;;  %v3806_v15 = vcombine.low %v333_v3, %v341_v4 }
  0xa6   : > { %3392 = vmatpush1.bf16.msra.mxu0 %v3770_v28  ;;  %3408 = vmatpush1.bf16.msra.mxu1 %v3778_v29  ;;  %v3795_v0 = vcombine.high %v379_v59, %v387_v60  ;;  %v3796_v6 = vcombine.low %v379_v59, %v387_v60  ;;  %v356_v11 = vld [vmem:[%s4333_s27 + $0xe0] sm:$0xff]  ;;  %v357_v13 = vld [vmem:[%s4333_s27 + $0xe8] sm:$0xff]  ;;  %v334_v34 = vld [vmem:[%s4333_s27 + $0x30] sm:$0xff] }
  0xa7   : > { %3394 = vmatprep.subr.bf16.mxu0 %v3771_v30  ;;  %3410 = vmatprep.subr.bf16.mxu1 %v3779_v31  ;;  %v3799_v16 = vcombine.high %v348_v10, %v356_v11  ;;  %v3807_v17 = vcombine.high %v349_v12, %v357_v13  ;;  %v364_v18 = vld [vmem:[%s4333_s27 + $0x120] sm:$0xff]  ;;  %v365_v20 = vld [vmem:[%s4333_s27 + $0x128] sm:$0xff]  ;;  %v3800_v22 = vcombine.low %v348_v10, %v356_v11  ;;  %v342_v35 = vld [vmem:[%s4333_s27 + $0x70] sm:$0xff] }
  0xa8   : > { %v372_v19 = vld [vmem:[%s4333_s27 + $0x160] sm:$0xff]  ;;  %v373_v21 = vld [vmem:[%s4333_s27 + $0x168] sm:$0xff]  ;;  %v3808_v23 = vcombine.low %v349_v12, %v357_v13  ;;  %v3813_v40 = vcombine.high %v334_v34, %v342_v35  ;;  %v350_v42 = vld [vmem:[%s4333_s27 + $0xb0] sm:$0xff] }
  0xa9   : > { %v3801_v24 = vcombine.high %v364_v18, %v372_v19  ;;  %v3809_v25 = vcombine.high %v365_v20, %v373_v21  ;;  %v380_v26 = vld [vmem:[%s4333_s27 + $0x1a0] sm:$0xff]  ;;  %v381_v28 = vld [vmem:[%s4333_s27 + $0x1a8] sm:$0xff]  ;;  %v3802_v30 = vcombine.low %v364_v18, %v372_v19  ;;  %v3810_v31 = vcombine.low %v365_v20, %v373_v21  ;;  %v358_v43 = vld [vmem:[%s4333_s27 + $0xf0] sm:$0xff] }
  0xaa   : > { %3396 = vmatpush1.bf16.msra.mxu0 %v3772_v36  ;;  %3412 = vmatpush1.bf16.msra.mxu1 %v3780_v37  ;;  %v388_v27 = vld [vmem:[%s4333_s27 + $0x1e0] sm:$0xff]  ;;  %v389_v29 = vld [vmem:[%s4333_s27 + $0x1e8] sm:$0xff]  ;;  %v335_v36 = vld [vmem:[%s4333_s27 + $0x38] sm:$0xff]  ;;  %v3815_v49 = vcombine.high %v350_v42, %v358_v43 }
  0xab   : > { %3414 = vmatprep.subr.bf16.mxu0 %v3781_v38  ;;  %3430 = vmatprep.subr.bf16.mxu1 %v3789_v39  ;;  %v3803_v32 = vcombine.high %v380_v26, %v388_v27  ;;  %v3811_v33 = vcombine.high %v381_v28, %v389_v29  ;;  %v343_v37 = vld [vmem:[%s4333_s27 + $0x78] sm:$0xff]  ;;  %v3804_v38 = vcombine.low %v380_v26, %v388_v27  ;;  %v366_v51 = vld [vmem:[%s4333_s27 + $0x130] sm:$0xff]  ;;  %v2998_v10 = vld [vmem:[%s4341_s21 + $0xc8] sm:$0xff]  }
  0xac   : > { %v3812_v39 = vcombine.low %v381_v28, %v389_v29  ;;  %v3821_v41 = vcombine.high %v335_v36, %v343_v37  ;;  %v374_v52 = vld [vmem:[%s4333_s27 + $0x170] sm:$0xff]  ;;  %v2974_v11 = vld [vmem:[%s4341_s21 + $0x8] sm:$0xff]   ;;  %v2976_v18 = vld [vmem:[%s4341_s21 + $0x18] sm:$0xff]  }
  0xad   : > { %2445 = vmatmul.mubr.msk.f32.vlgmr.msra.gmra.mrb[0].mxu0 %vm604_vm0, %v4375_v44  ;;  %2446 = vmatmul.mubr.msk.f32.vlgmr.msra.gmra.mrb[0].mxu1 %vm604_vm0, %v4375_v44  ;;  %v3817_v57 = vcombine.high %v366_v51, %v374_v52  ;;  %v382_v59 = vld [vmem:[%s4333_s27 + $0x1b0] sm:$0xff]  ;;  %v2990_v12 = vld [vmem:[%s4341_s21 + $0x88] sm:$0xff]   ;;  %v2992_v19 = vld [vmem:[%s4341_s21 + $0x98] sm:$0xff]  }
  0xae   : > { %3416 = vmatpush1.bf16.msra.mxu0 %v3782_v45  ;;  %3432 = vmatpush1.bf16.msra.mxu1 %v3790_v46  ;;  %v351_v45 = vld [vmem:[%s4333_s27 + $0xb8] sm:$0xff]  ;;  %v390_v60 = vld [vmem:[%s4333_s27 + $0x1f0] sm:$0xff]  ;;  %v2985_v20 = vld [vmem:[%s4341_s21 + $0x60] sm:$0xff]  }
  0xaf   : > { %3418 = vmatprep.subr.bf16.mxu0 %v3783_v47  ;;  %3434 = vmatprep.subr.bf16.mxu1 %v3791_v48  ;;  %v359_v46 = vld [vmem:[%s4333_s27 + $0xf8] sm:$0xff]  ;;  %v3814_v47 = vcombine.low %v334_v34, %v342_v35  ;;  %v3822_v48 = vcombine.low %v335_v36, %v343_v37  ;;  %v3819_v1 = vcombine.high %v382_v59, %v390_v60  ;;  %v2983_v13 = vld [vmem:[%s4341_s21 + $0x50] sm:$0xff]   ;;  %v3001_v21 = vld [vmem:[%s4341_s21 + $0xe0] sm:$0xff]  }
  0xb0   : > { %814 = vmatprep.mubr.f32.mxu0 %v4103_v9  ;;  %885 = vmatprep.mubr.f32.mxu1 %v4103_v9  ;;  %v3823_v50 = vcombine.high %v351_v45, %v359_v46  ;;  %v3820_v3 = vcombine.low %v382_v59, %v390_v60  ;;  %v2978_v26 = vld [vmem:[%s4341_s21 + $0x28] sm:$0xff]   ;;  %v2987_v28 = vld [vmem:[%s4341_s21 + $0x70] sm:$0xff]   ;;  %v2980_v34 = vld [vmem:[%s4341_s21 + $0x38] sm:$0xff]  }
  0xb1   : > { %v2994_v27 = vld [vmem:[%s4341_s21 + $0xa8] sm:$0xff]   ;;  %v3003_v29 = vld [vmem:[%s4341_s21 + $0xf0] sm:$0xff]   ;;  %v2996_v35 = vld [vmem:[%s4341_s21 + $0xb8] sm:$0xff]  }
  0xb2   : > { %3420 = vmatpush1.bf16.msra.mxu0 %v3784_v53  ;;  %3436 = vmatpush1.bf16.msra.mxu1 %v3792_v54  ;;  %v367_v53 = vld [vmem:[%s4333_s27 + $0x138] sm:$0xff]  ;;  %v3013_v36 = vld [vmem:[%s4341_s21 + $0x140] sm:$0xff]  }
  0xb3   : > { %3422 = vmatprep.subr.bf16.mxu0 %v3785_v55  ;;  %3438 = vmatprep.subr.bf16.mxu1 %v3793_v56  ;;  %v375_v54 = vld [vmem:[%s4333_s27 + $0x178] sm:$0xff]  ;;  %v3816_v55 = vcombine.low %v350_v42, %v358_v43  ;;  %v3824_v56 = vcombine.low %v351_v45, %v359_v46  ;;  %v3029_v37 = vld [vmem:[%s4341_s21 + $0x1c0] sm:$0xff]  }
  0xb4   : > { %v3825_v58 = vcombine.high %v367_v53, %v375_v54 }
  0xb6   : > { %3424 = vmatpush1.bf16.msra.mxu0 %v3786_v61  ;;  %3440 = vmatpush1.bf16.msra.mxu1 %v3794_v62  ;;  %v383_v61 = vld [vmem:[%s4333_s27 + $0x1b8] sm:$0xff] }
  0xb7   : > { %3426 = vmatprep.subr.bf16.mxu0 %v3787_v63  ;;  %3442 = vmatprep.subr.bf16.mxu1 %v3795_v0  ;;  %v391_v62 = vld [vmem:[%s4333_s27 + $0x1f8] sm:$0xff]  ;;  %v3818_v63 = vcombine.low %v366_v51, %v374_v52  ;;  %v3826_v0 = vcombine.low %v367_v53, %v375_v54 }
  0xb8   : > { %v3827_v2 = vcombine.high %v383_v61, %v391_v62  ;;  %v3828_v4 = vcombine.low %v383_v61, %v391_v62 }
  0xba   : > { %3428 = vmatpush1.bf16.msra.mxu0 %v3788_v5  ;;  %3444 = vmatpush1.bf16.msra.mxu1 %v3796_v6  ;;  %v2997_v5 = vld [vmem:[%s4341_s21 + $0xc0] sm:$0xff]  }
  0xbb   : > { %3446 = vmatprep.subr.bf16.mxu0 %v3797_v7  ;;  %3462 = vmatprep.subr.bf16.mxu1 %v3805_v8  ;;  %v2463_v6 = vld [vmem:[%s4341_s21] sm:$0xff]   ;;  %v2982_v8 = vld [vmem:[%s4341_s21 + $0x48] sm:$0xff]  }
  0xbc   : > { %v2989_v7 = vld [vmem:[%s4341_s21 + $0x80] sm:$0xff]  }
  0xbd   : > { %2447 = vmatmul.mubr.msk.f32.vlgmr.msra.gmra.mrb[2].mxu0 %vm604_vm0, %v4375_v44  ;;  %2448 = vmatmul.mubr.msk.f32.vlgmr.msra.gmra.mrb[2].mxu1 %vm604_vm0, %v4375_v44 }
  0xbe   : > { %3448 = vmatpush1.bf16.msra.mxu0 %v3798_v14  ;;  %3464 = vmatpush1.bf16.msra.mxu1 %v3806_v15  ;;  %v2999_v14 = vld [vmem:[%s4341_s21 + $0xd0] sm:$0xff]  }
  0xbf   : > { %3450 = vmatprep.subr.bf16.mxu0 %v3799_v16  ;;  %3466 = vmatprep.subr.bf16.mxu1 %v3807_v17  ;;  %v2975_v15 = vld [vmem:[%s4341_s21 + $0x10] sm:$0xff]   ;;  %v2984_v16 = vld [vmem:[%s4341_s21 + $0x58] sm:$0xff]  }
  0xc0   : > { %956 = vmatprep.mubr.f32.mxu0 %v4103_v9  ;;  %1027 = vmatprep.mubr.f32.mxu1 %v4103_v9  ;;  %v3000_v17 = vld [vmem:[%s4341_s21 + $0xd8] sm:$0xff]  }
  0xc2   : > { %3452 = vmatpush1.bf16.msra.mxu0 %v3800_v22  ;;  %3468 = vmatpush1.bf16.msra.mxu1 %v3808_v23  ;;  %v2977_v22 = vld [vmem:[%s4341_s21 + $0x20] sm:$0xff]  }
  0xc3   : > { %3454 = vmatprep.subr.bf16.mxu0 %v3801_v24  ;;  %3470 = vmatprep.subr.bf16.mxu1 %v3809_v25  ;;  %v2993_v23 = vld [vmem:[%s4341_s21 + $0xa0] sm:$0xff]   ;;  %v2986_v24 = vld [vmem:[%s4341_s21 + $0x68] sm:$0xff]  }
  0xc4   : > { %v3002_v25 = vld [vmem:[%s4341_s21 + $0xe8] sm:$0xff]  }
  0xc6   : > { %3456 = vmatpush1.bf16.msra.mxu0 %v3802_v30  ;;  %3472 = vmatpush1.bf16.msra.mxu1 %v3810_v31  ;;  %v2979_v30 = vld [vmem:[%s4341_s21 + $0x30] sm:$0xff]  }
  0xc7   : > { %3458 = vmatprep.subr.bf16.mxu0 %v3803_v32  ;;  %3474 = vmatprep.subr.bf16.mxu1 %v3811_v33  ;;  %v2995_v31 = vld [vmem:[%s4341_s21 + $0xb0] sm:$0xff]   ;;  %v2988_v32 = vld [vmem:[%s4341_s21 + $0x78] sm:$0xff]  }
  0xc8   : > { %v3004_v33 = vld [vmem:[%s4341_s21 + $0xf8] sm:$0xff]  }
  0xca   : > { %3460 = vmatpush1.bf16.msra.mxu0 %v3804_v38  ;;  %3476 = vmatpush1.bf16.msra.mxu1 %v3812_v39  ;;  %v524_v38 = vlaneseq }
  0xcb   : > { %3478 = vmatprep.subr.bf16.mxu0 %v3813_v40  ;;  %3494 = vmatprep.subr.bf16.mxu1 %v3821_v41  ;;  %v4477_v41 = vld [vmem:[%s4339_s7] sm:$0xff] }
  0xcc   : > { %v4473_v39 = vshrl.u32 %v524_v38, 7 }
  0xcd   : > { %2449 = vmatmul.mubr.msk.f32.vlgmr.msra.gmra.mrb[4].mxu0 %vm604_vm0, %v4375_v44  ;;  %2450 = vmatmul.mubr.msk.f32.vlgmr.msra.gmra.mrb[4].mxu1 %vm604_vm0, %v4375_v44 }
  0xce   : > { %3480 = vmatpush1.bf16.msra.mxu0 %v3814_v47  ;;  %3496 = vmatpush1.bf16.msra.mxu1 %v3822_v48  ;;  %v526_v40 = vsub.s32 0, %v4473_v39  ;;  %v534_v42 = vsub.s32 2, %v4473_v39  ;;  %v530_v43 = vsub.s32 1, %v4473_v39  ;;  %v538_v45 = vsub.s32 3, %v4473_v39 }
  0xcf   : > { %3482 = vmatprep.subr.bf16.mxu0 %v3815_v49  ;;  %3498 = vmatprep.subr.bf16.mxu1 %v3823_v50 }
  0xd0   : > { %1098 = vmatprep.mubr.f32.mxu0 %v4103_v9  ;;  %1169 = vmatprep.mubr.f32.mxu1 %v4103_v9  ;;  %v2981_v9 = vld [vmem:[%s4341_s21 + $0x40] sm:$0xff]   ;;  %v527_v46 = vrot.slane %v4477_v41, %v526_v40  ;;  %v535_v47 = vrot.slane %v4477_v41, %v534_v42  ;;  %v531_v48 = vrot.slane %v4477_v41, %v530_v43 }
  0xd1   : > { %v539_v49 = vrot.slane %v4477_v41, %v538_v45 }
  0xd2   : > { %3484 = vmatpush1.bf16.msra.mxu0 %v3816_v55  ;;  %3500 = vmatpush1.bf16.msra.mxu1 %v3824_v56 }
  0xd3   : > { %3486 = vmatprep.subr.bf16.mxu0 %v3817_v57  ;;  %3502 = vmatprep.subr.bf16.mxu1 %v3825_v58 }
  0xd6   : > { %3488 = vmatpush1.bf16.msra.mxu0 %v3818_v63  ;;  %3504 = vmatpush1.bf16.msra.mxu1 %v3826_v0  ;;  %v3005_v63 = vld [vmem:[%s4341_s21 + $0x100] sm:$0xff]  }
  0xd7   : > { %3490 = vmatprep.subr.bf16.mxu0 %v3819_v1  ;;  %3506 = vmatprep.subr.bf16.mxu1 %v3827_v2  ;;  %v3021_v2 = vld [vmem:[%s4341_s21 + $0x180] sm:$0xff]  }
  0xda   : > { %3492 = vmatpush1.bf16.msra.mxu0 %v3820_v3  ;;  %3508 = vmatpush1.bf16.msra.mxu1 %v3828_v4  ;;  %v3014_v3 = vld [vmem:[%s4341_s21 + $0x148] sm:$0xff]  }
  0xdb   : > { %3510 = vmatprep.subr.bf16.mxu0 %v2981_v9  ;;  %3542 = vmatprep.subr.bf16.mxu1 %v2997_v5  ;;  %v3030_v9 = vld [vmem:[%s4341_s21 + $0x1c8] sm:$0xff]  }
  0xdc   : > { %v3006_v5 = vld [vmem:[%s4341_s21 + $0x108] sm:$0xff]  }
  0xdd   : > { %2451 = vmatmul.mubr.msk.f32.vlgmr.msra.gmra.mrb[6].mxu0 %vm604_vm0, %v4375_v44  ;;  %2452 = vmatmul.mubr.msk.f32.vlgmr.msra.gmra.mrb[6].mxu1 %vm604_vm0, %v4375_v44  ;;  %v2991_v44 = vld [vmem:[%s4341_s21 + $0x90] sm:$0xff]  }
  0xde   : > { %3512 = vmatpush3.bf16.msra.mxu0 %v2463_v6  ;;  %3544 = vmatpush3.bf16.msra.mxu1 %v2989_v7  ;;  %v546_v6 = vsub.s32 5, %v4473_v39  ;;  %v3022_v7 = vld [vmem:[%s4341_s21 + $0x188] sm:$0xff]  }
  0xdf   : > { %3514 = vmatprep.subr.bf16.mxu0 %v2982_v8  ;;  %3546 = vmatprep.subr.bf16.mxu1 %v2998_v10  ;;  %v3015_v8 = vld [vmem:[%s4341_s21 + $0x150] sm:$0xff]   ;;  %v554_v10 = vsub.s32 7, %v4473_v39 }
  0xe2   : > { %3516 = vmatpush3.bf16.msra.mxu0 %v2974_v11  ;;  %3548 = vmatpush3.bf16.msra.mxu1 %v2990_v12  ;;  %v3031_v11 = vld [vmem:[%s4341_s21 + $0x1d0] sm:$0xff]  }
  0xe3   : > { %3518 = vmatprep.subr.bf16.mxu0 %v2983_v13  ;;  %3550 = vmatprep.subr.bf16.mxu1 %v2999_v14  ;;  %v3007_v12 = vld [vmem:[%s4341_s21 + $0x110] sm:$0xff]   ;;  %v547_v13 = vrot.slane %v4477_v41, %v546_v6 }
  0xe4   : > { %v3023_v14 = vld [vmem:[%s4341_s21 + $0x190] sm:$0xff]  }
  0xe6   : > { %3520 = vmatpush3.bf16.msra.mxu0 %v2975_v15  ;;  %3552 = vmatpush3.bf16.msra.mxu1 %v2991_v44  ;;  %v3016_v15 = vld [vmem:[%s4341_s21 + $0x158] sm:$0xff]   ;;  %v555_v44 = vrot.slane %v4477_v41, %v554_v10 }
  0xe7   : > { %3522 = vmatprep.subr.bf16.mxu0 %v2984_v16  ;;  %3554 = vmatprep.subr.bf16.mxu1 %v3000_v17  ;;  %v3032_v16 = vld [vmem:[%s4341_s21 + $0x1d8] sm:$0xff]  }
  0xea   : > { %3524 = vmatpush3.bf16.msra.mxu0 %v2976_v18  ;;  %3556 = vmatpush3.bf16.msra.mxu1 %v2992_v19 }
  0xeb   : > { %3526 = vmatprep.subr.bf16.mxu0 %v2985_v20  ;;  %3558 = vmatprep.subr.bf16.mxu1 %v3001_v21  ;;  %v3008_v20 = vld [vmem:[%s4341_s21 + $0x118] sm:$0xff]  }
  0xee   : > { %3528 = vmatpush3.bf16.msra.mxu0 %v2977_v22  ;;  %3560 = vmatpush3.bf16.msra.mxu1 %v2993_v23  ;;  %v3024_v23 = vld [vmem:[%s4341_s21 + $0x198] sm:$0xff]  }
  0xef   : > { %3530 = vmatprep.subr.bf16.mxu0 %v2986_v24  ;;  %3562 = vmatprep.subr.bf16.mxu1 %v3002_v25  ;;  %v3017_v24 = vld [vmem:[%s4341_s21 + $0x160] sm:$0xff]  }
  0xf2   : > { %3532 = vmatpush3.bf16.msra.mxu0 %v2978_v26  ;;  %3564 = vmatpush3.bf16.msra.mxu1 %v2994_v27  ;;  %v3033_v26 = vld [vmem:[%s4341_s21 + $0x1e0] sm:$0xff]  }
  0xf3   : > { %3534 = vmatprep.subr.bf16.mxu0 %v2987_v28  ;;  %3566 = vmatprep.subr.bf16.mxu1 %v3003_v29  ;;  %v3009_v29 = vld [vmem:[%s4341_s21 + $0x120] sm:$0xff]  }
  0xf6   : > { %3536 = vmatpush3.bf16.msra.mxu0 %v2979_v30  ;;  %3568 = vmatpush3.bf16.msra.mxu1 %v2995_v31  ;;  %v550_v30 = vsub.s32 6, %v4473_v39 }
  0xf7   : > { %3538 = vmatprep.subr.bf16.mxu0 %v2988_v32  ;;  %3570 = vmatprep.subr.bf16.mxu1 %v3004_v33  ;;  %v3025_v32 = vld [vmem:[%s4341_s21 + $0x1a0] sm:$0xff]   ;;  %v3018_v33 = vld [vmem:[%s4341_s21 + $0x168] sm:$0xff]  }
  0xf8   : > { %v551_v38 = vrot.slane %v4477_v41, %v550_v30 }
  0xfa   : > { %3540 = vmatpush3.bf16.msra.mxu0 %v2980_v34  ;;  %3572 = vmatpush3.bf16.msra.mxu1 %v2996_v35  ;;  %v542_v34 = vsub.s32 4, %v4473_v39  ;;  %v3044_v39 = vld [vmem:[%s4341_s21 + $0x238] sm:$0xff]  }
  0xfb   : > { %3574 = vmatprep.subr.bf16.mxu0 %v3013_v36  ;;  %3606 = vmatprep.subr.bf16.mxu1 %v3029_v37  ;;  %v3034_v36 = vld [vmem:[%s4341_s21 + $0x1e8] sm:$0xff]  }
  0xfc   : > { %v3010_v37 = vld [vmem:[%s4341_s21 + $0x128] sm:$0xff]  }
 0x180   : > { %v674_v50 = vpop.f32.mrb[0].mxu0  ;;  %v745_v52 = vpop.f32.mrb[0].mxu1 }
 0x181   : > { %v675_v51 = vadd.f32 %v674_v50, %v527_v46  ;;  %v676_v53 = vpop.f32.mrb[1].mxu0  ;;  %v746_v54 = vadd.f32 %v745_v52, %v535_v47  ;;  %v747_v56 = vpop.f32.mrb[1].mxu1  ;;  %v4529_v46 = vld [vmem:[%s4339_s7 + $0x8] sm:$0xff]  ;;  %v3035_v50 = vld [vmem:[%s4341_s21 + $0x1f0] sm:$0xff]  }
 0x182   : > { %v677_v55 = vadd.f32 %v676_v53, %v531_v48  ;;  %v748_v58 = vadd.f32 %v747_v56, %v539_v49  ;;  %v3026_v47 = vld [vmem:[%s4341_s21 + $0x1a8] sm:$0xff]   ;;  %v543_v48 = vrot.slane %v4477_v41, %v542_v34  ;;  %v3019_v49 = vld [vmem:[%s4341_s21 + $0x170] sm:$0xff]   ;;  %v567_v41 = vrot.slane %v4529_v46, %v534_v42  ;;  %v3012_v42 = vld [vmem:[%s4341_s21 + $0x138] sm:$0xff]  }
 0x183   : > { %v1192_v57 = vmul.f32 0.2, %v675_v51  ;;  %vm1176_vm1 = vcmp.ge.f32.partialorder %v675_v51, 0.0  ;;  %v1194_v59 = vmul.f32 0.2, %v746_v54  ;;  %vm1178_vm3 = vcmp.ge.f32.partialorder %v746_v54, 0.0 }
 0x184   : > { %v1193_v60 = vmul.f32 0.2, %v677_v55  ;;  %vm1177_vm2 = vcmp.ge.f32.partialorder %v677_v55, 0.0  ;;  %v1195_v61 = vmul.f32 0.2, %v748_v58  ;;  %vm1179_vm4 = vcmp.ge.f32.partialorder %v748_v58, 0.0 }
 0x185   : > { %v1208_v1 = vsel %vm1176_vm1, %v675_v51, %v1192_v57  ;;  %v1210_v4 = vsel %vm1178_vm3, %v746_v54, %v1194_v59  ;;  %v559_v51 = vrot.slane %v4529_v46, %v526_v40  ;;  %v3011_v53 = vld [vmem:[%s4341_s21 + $0x130] sm:$0xff]   ;;  %v563_v54 = vrot.slane %v4529_v46, %v530_v43  ;;  %v3020_v57 = vld [vmem:[%s4341_s21 + $0x178] sm:$0xff]  }
 0x186   : > { %v1209_v62 = vsel %vm1177_vm2, %v677_v55, %v1193_v60  ;;  %v1211_v0 = vsel %vm1179_vm4, %v748_v58, %v1195_v61  ;;  %v3027_v56 = vld [vmem:[%s4341_s21 + $0x1b0] sm:$0xff]   ;;  %v571_v40 = vrot.slane %v4529_v46, %v538_v45  ;;  %v3036_v58 = vld [vmem:[%s4341_s21 + $0x1f8] sm:$0xff]  }
 0x187   : > { %1801 = vmatprep.mubr.f32.mxu0 %v1209_v62  ;;  %1871 = vmatprep.mubr.f32.mxu1 %v1211_v0 }
 0x188   : > { %1802 = vmatmul.mubr.f32.vlgmr.msra.gmra.mrb[8].mxu0 %v1208_v1  ;;  %1872 = vmatmul.mubr.f32.vlgmr.msra.gmra.mrb[8].mxu1 %v1210_v4 }
 0x189   : > { %3576 = vmatpush3.bf16.msra.mxu0 %v3005_v63  ;;  %3608 = vmatpush3.bf16.msra.mxu1 %v3021_v2  ;;  %v3028_v2 = vld [vmem:[%s4341_s21 + $0x1b8] sm:$0xff]  }
 0x18a   : > { %3578 = vmatprep.subr.bf16.mxu0 %v3014_v3  ;;  %3610 = vmatprep.subr.bf16.mxu1 %v3030_v9  ;;  %v3045_v3 = vld [vmem:[%s4341_s21 + $0x240] sm:$0xff]  }
 0x18b   : > { %v3061_v9 = vld [vmem:[%s4341_s21 + $0x2c0] sm:$0xff]  }
 0x18d   : > { %3580 = vmatpush3.bf16.msra.mxu0 %v3006_v5  ;;  %3612 = vmatpush3.bf16.msra.mxu1 %v3022_v7 }
 0x18e   : > { %3582 = vmatprep.subr.bf16.mxu0 %v3015_v8  ;;  %3614 = vmatprep.subr.bf16.mxu1 %v3031_v11  ;;  %v3037_v11 = vld [vmem:[%s4341_s21 + $0x200] sm:$0xff]  }
 0x190   : > { %v816_v17 = vpop.f32.mrb[2].mxu0  ;;  %v887_v19 = vpop.f32.mrb[2].mxu1 }
 0x191   : > { %3584 = vmatpush3.bf16.msra.mxu0 %v3007_v12  ;;  %v818_v18 = vpop.f32.mrb[3].mxu0  ;;  %3616 = vmatpush3.bf16.msra.mxu1 %v3023_v14  ;;  %v889_v22 = vpop.f32.mrb[3].mxu1  ;;  %v888_v52 = vadd.f32 %v887_v19, %v551_v38  ;;  %v817_v55 = vadd.f32 %v816_v17, %v543_v48  ;;  %v3046_v14 = vld [vmem:[%s4341_s21 + $0x248] sm:$0xff]   ;;  %v3047_v19 = vld [vmem:[%s4341_s21 + $0x250] sm:$0xff]   ;;  %v3057_v38 = vld [vmem:[%s4341_s21 + $0x2a0] sm:$0xff]  }
 0x192   : > { %3586 = vmatprep.subr.bf16.mxu0 %v3016_v15  ;;  %v819_v21 = vadd.f32 %v818_v18, %v547_v13  ;;  %3618 = vmatprep.subr.bf16.mxu1 %v3032_v16  ;;  %v890_v25 = vadd.f32 %v889_v22, %v555_v44  ;;  %v3053_v13 = vld [vmem:[%s4341_s21 + $0x280] sm:$0xff]   ;;  %v3062_v15 = vld [vmem:[%s4341_s21 + $0x2c8] sm:$0xff]   ;;  %v3039_v22 = vld [vmem:[%s4341_s21 + $0x210] sm:$0xff]  }
 0x193   : > { %v1198_v62 = vmul.f32 0.2, %v888_v52  ;;  %v1196_v45 = vmul.f32 0.2, %v817_v55  ;;  %vm1182_vm7 = vcmp.ge.f32.partialorder %v888_v52, 0.0  ;;  %vm1180_vm8 = vcmp.ge.f32.partialorder %v817_v55, 0.0 }
 0x194   : > { %v1197_v27 = vmul.f32 0.2, %v819_v21  ;;  %vm1181_vm5 = vcmp.ge.f32.partialorder %v819_v21, 0.0  ;;  %v1199_v28 = vmul.f32 0.2, %v890_v25  ;;  %vm1183_vm6 = vcmp.ge.f32.partialorder %v890_v25, 0.0 }
 0x195   : > { %3588 = vmatpush3.bf16.msra.mxu0 %v3008_v20  ;;  %3620 = vmatpush3.bf16.msra.mxu1 %v3024_v23  ;;  %v1214_v8 = vsel %vm1182_vm7, %v888_v52, %v1198_v62  ;;  %v1212_v12 = vsel %vm1180_vm8, %v817_v55, %v1196_v45  ;;  %v3038_v17 = vld [vmem:[%s4341_s21 + $0x208] sm:$0xff]   ;;  %v3063_v20 = vld [vmem:[%s4341_s21 + $0x2d0] sm:$0xff]   ;;  %v583_v23 = vrot.slane %v4529_v46, %v550_v30  ;;  %v3040_v30 = vld [vmem:[%s4341_s21 + $0x218] sm:$0xff]  }
 0x196   : > { %3590 = vmatprep.subr.bf16.mxu0 %v3017_v24  ;;  %v1213_v31 = vsel %vm1181_vm5, %v819_v21, %v1197_v27  ;;  %3622 = vmatprep.subr.bf16.mxu1 %v3033_v26  ;;  %v1215_v35 = vsel %vm1183_vm6, %v890_v25, %v1199_v28  ;;  %v3054_v18 = vld [vmem:[%s4341_s21 + $0x288] sm:$0xff]   ;;  %v575_v21 = vrot.slane %v4529_v46, %v542_v34  ;;  %v3055_v24 = vld [vmem:[%s4341_s21 + $0x290] sm:$0xff]   ;;  %v3048_v25 = vld [vmem:[%s4341_s21 + $0x258] sm:$0xff]  }
 0x197   : > { %1941 = vmatprep.mubr.f32.mxu0 %v1213_v31  ;;  %2011 = vmatprep.mubr.f32.mxu1 %v1215_v35  ;;  %v3064_v26 = vld [vmem:[%s4341_s21 + $0x2d8] sm:$0xff]   ;;  %v3049_v35 = vld [vmem:[%s4341_s21 + $0x260] sm:$0xff]   ;;  %v3066_v48 = vld [vmem:[%s4341_s21 + $0x2e8] sm:$0xff]  }
 0x198   : > { %v3056_v34 = vld [vmem:[%s4341_s21 + $0x298] sm:$0xff]   ;;  %v3067_v52 = vld [vmem:[%s4341_s21 + $0x2f0] sm:$0xff]   ;;  %v3085_v45 = vld [vmem:[%s4341_s21 + $0x380] sm:$0xff]  }
 0x199   : > { %3592 = vmatpush3.bf16.msra.mxu0 %v3009_v29  ;;  %3624 = vmatpush3.bf16.msra.mxu1 %v3025_v32  ;;  %v3059_v55 = vld [vmem:[%s4341_s21 + $0x2b0] sm:$0xff]  }
 0x19a   : > { %3594 = vmatprep.subr.bf16.mxu0 %v3018_v33  ;;  %3626 = vmatprep.subr.bf16.mxu1 %v3034_v36  ;;  %v3065_v36 = vld [vmem:[%s4341_s21 + $0x2e0] sm:$0xff]  }
 0x19d   : > { %3596 = vmatpush3.bf16.msra.mxu0 %v3010_v37  ;;  %3628 = vmatpush3.bf16.msra.mxu1 %v3026_v47  ;;  %v3041_v37 = vld [vmem:[%s4341_s21 + $0x220] sm:$0xff]   ;;  %v3050_v47 = vld [vmem:[%s4341_s21 + $0x268] sm:$0xff]  }
 0x19e   : > { %3598 = vmatprep.subr.bf16.mxu0 %v3019_v49  ;;  %3630 = vmatprep.subr.bf16.mxu1 %v3035_v50  ;;  %v3042_v49 = vld [vmem:[%s4341_s21 + $0x228] sm:$0xff]  }
 0x19f   : > { %v3058_v50 = vld [vmem:[%s4341_s21 + $0x2a8] sm:$0xff]  }
 0x1a0   : > { %v958_v59 = vpop.f32.mrb[4].mxu0  ;;  %v1029_v61 = vpop.f32.mrb[4].mxu1 }
 0x1a1   : > { %3600 = vmatpush3.bf16.msra.mxu0 %v3011_v53  ;;  %v4553_v60 = vadd.f32 %v958_v59, %v559_v51  ;;  %v960_v43 = vpop.f32.mrb[5].mxu0  ;;  %3632 = vmatpush3.bf16.msra.mxu1 %v3027_v56  ;;  %v4556_v0 = vadd.f32 %v1029_v61, %v567_v41  ;;  %v1031_v1 = vpop.f32.mrb[5].mxu1  ;;  %v3051_v51 = vld [vmem:[%s4341_s21 + $0x270] sm:$0xff]   ;;  %v579_v53 = vrot.slane %v4529_v46, %v546_v6  ;;  %v3052_v56 = vld [vmem:[%s4341_s21 + $0x278] sm:$0xff]   ;;  %v3077_v59 = vld [vmem:[%s4341_s21 + $0x340] sm:$0xff]  }
 0x1a2   : > { %3602 = vmatprep.subr.bf16.mxu0 %v3020_v57  ;;  %v961_v63 = vadd.f32 %v960_v43, %v563_v54  ;;  %3634 = vmatprep.subr.bf16.mxu1 %v3036_v58  ;;  %v1032_v4 = vadd.f32 %v1031_v1, %v571_v40  ;;  %v587_v54 = vrot.slane %v4529_v46, %v554_v10  ;;  %v3043_v41 = vld [vmem:[%s4341_s21 + $0x230] sm:$0xff]   ;;  %v3068_v57 = vld [vmem:[%s4341_s21 + $0x2f8] sm:$0xff]   ;;  %v3093_v43 = vld [vmem:[%s4341_s21 + $0x3c0] sm:$0xff]  }
 0x1a3   : > { %v1202_v6 = vmul.f32 0.2, %v4556_v0  ;;  %v1200_v10 = vmul.f32 0.2, %v4553_v60  ;;  %vm1186_vm11 = vcmp.ge.f32.partialorder %v4556_v0, 0.0  ;;  %v3060_v46 = vld [vmem:[%s4341_s21 + $0x2b8] sm:$0xff]  }
 0x1a4   : > { %v1201_v5 = vmul.f32 0.2, %v961_v63  ;;  %v1203_v7 = vmul.f32 0.2, %v1032_v4  ;;  %vm1185_vm9 = vcmp.ge.f32.partialorder %v961_v63, 0.0  ;;  %vm1187_vm10 = vcmp.ge.f32.partialorder %v1032_v4, 0.0 }
 0x1a5   : > { %3604 = vmatpush3.bf16.msra.mxu0 %v3012_v42  ;;  %3636 = vmatpush3.bf16.msra.mxu1 %v3028_v2  ;;  %vm1184_vm12 = vcmp.ge.f32.partialorder %v4553_v60, 0.0  ;;  %v1218_v42 = vsel %vm1186_vm11, %v4556_v0, %v1202_v6  ;;  %v3078_v2 = vld [vmem:[%s4341_s21 + $0x348] sm:$0xff]  }
 0x1a6   : > { %3638 = vmatprep.subr.bf16.mxu0 %v3045_v3  ;;  %3670 = vmatprep.subr.bf16.mxu1 %v3061_v9  ;;  %v1217_v44 = vsel %vm1185_vm9, %v961_v63, %v1201_v5  ;;  %v1219_v16 = vsel %vm1187_vm10, %v1032_v4, %v1203_v7  ;;  %v3069_v63 = vld [vmem:[%s4341_s21 + $0x300] sm:$0xff]   ;;  %v1216_v1 = vsel %vm1184_vm12, %v4553_v60, %v1200_v10  ;;  %v3094_v3 = vld [vmem:[%s4341_s21 + $0x3c8] sm:$0xff]   ;;  %v3079_v60 = vld [vmem:[%s4341_s21 + $0x350] sm:$0xff]  }
 0x1a7   : > { %v3070_v9 = vld [vmem:[%s4341_s21 + $0x308] sm:$0xff]   ;;  %v3095_v7 = vld [vmem:[%s4341_s21 + $0x3d0] sm:$0xff]  }
 0x1a8   : > { %1942 = vmatmul.mubr.f32.vlgmr.msra.gmra.mrb[10].mxu0 %v1212_v12  ;;  %2012 = vmatmul.mubr.f32.vlgmr.msra.gmra.mrb[10].mxu1 %v1214_v8  ;;  %v3086_v5 = vld [vmem:[%s4341_s21 + $0x388] sm:$0xff]   ;;  %v3071_v8 = vld [vmem:[%s4341_s21 + $0x310] sm:$0xff]   ;;  %v3080_v12 = vld [vmem:[%s4341_s21 + $0x358] sm:$0xff]  }
 0x1a9   : > { %3640 = vmatpush3.bf16.msra.mxu0 %v3037_v11  ;;  %3672 = vmatpush3.bf16.msra.mxu1 %v3053_v13  ;;  %v3087_v11 = vld [vmem:[%s4341_s21 + $0x390] sm:$0xff]   ;;  %v3096_v13 = vld [vmem:[%s4341_s21 + $0x3d8] sm:$0xff]  }
 0x1aa   : > { %3642 = vmatprep.subr.bf16.mxu0 %v3046_v14  ;;  %3674 = vmatprep.subr.bf16.mxu1 %v3062_v15  ;;  %v3072_v14 = vld [vmem:[%s4341_s21 + $0x318] sm:$0xff]  }
 0x1ab   : > { %2081 = vmatprep.mubr.f32.mxu0 %v1217_v44  ;;  %2151 = vmatprep.mubr.f32.mxu1 %v1219_v16  ;;  %v3088_v15 = vld [vmem:[%s4341_s21 + $0x398] sm:$0xff]   ;;  %v3081_v44 = vld [vmem:[%s4341_s21 + $0x360] sm:$0xff]  }
 0x1ac   : > { %v3097_v16 = vld [vmem:[%s4341_s21 + $0x3e0] sm:$0xff]  }
 0x1ad   : > { %3644 = vmatpush3.bf16.msra.mxu0 %v3038_v17  ;;  %3676 = vmatpush3.bf16.msra.mxu1 %v3054_v18  ;;  %v3073_v17 = vld [vmem:[%s4341_s21 + $0x320] sm:$0xff]  }
 0x1ae   : > { %3646 = vmatprep.subr.bf16.mxu0 %v3047_v19  ;;  %3678 = vmatprep.subr.bf16.mxu1 %v3063_v20  ;;  %v3089_v18 = vld [vmem:[%s4341_s21 + $0x3a0] sm:$0xff]   ;;  %v3082_v19 = vld [vmem:[%s4341_s21 + $0x368] sm:$0xff]  }
 0x1af   : > { %v3098_v20 = vld [vmem:[%s4341_s21 + $0x3e8] sm:$0xff]  }
 0x1b0   : > { %v1100_v27 = vpop.f32.mrb[6].mxu0  ;;  %v1171_v31 = vpop.f32.mrb[6].mxu1 }
 0x1b1   : > { %3648 = vmatpush3.bf16.msra.mxu0 %v3039_v22  ;;  %v4579_v28 = vadd.f32 %v1100_v27, %v575_v21  ;;  %v1102_v29 = vpop.f32.mrb[7].mxu0  ;;  %3680 = vmatpush3.bf16.msra.mxu1 %v3055_v24  ;;  %v4582_v32 = vadd.f32 %v1171_v31, %v583_v23  ;;  %v1173_v33 = vpop.f32.mrb[7].mxu1  ;;  %v3074_v21 = vld [vmem:[%s4341_s21 + $0x328] sm:$0xff]   ;;  %v3083_v23 = vld [vmem:[%s4341_s21 + $0x370] sm:$0xff]   ;;  %v3084_v27 = vld [vmem:[%s4341_s21 + $0x378] sm:$0xff]  }
 0x1b2   : > { %3650 = vmatprep.subr.bf16.mxu0 %v3048_v25  ;;  %3682 = vmatprep.subr.bf16.mxu1 %v3064_v26  ;;  %v1103_v40 = vadd.f32 %v1102_v29, %v579_v53  ;;  %v1174_v58 = vadd.f32 %v1173_v33, %v587_v54  ;;  %v3090_v22 = vld [vmem:[%s4341_s21 + $0x3a8] sm:$0xff]   ;;  %v3099_v24 = vld [vmem:[%s4341_s21 + $0x3f0] sm:$0xff]   ;;  %v3100_v29 = vld [vmem:[%s4341_s21 + $0x3f8] sm:$0xff]  }
 0x1b3   : > { %v3075_v25 = vld [vmem:[%s4341_s21 + $0x330] sm:$0xff]   ;;  %v3076_v31 = vld [vmem:[%s4341_s21 + $0x338] sm:$0xff]   ;;  %vm1188_vm15 = vcmp.ge.f32.partialorder %v4579_v28, 0.0  ;;  %vm1190_vm0 = vcmp.ge.f32.partialorder %v4582_v32, 0.0 }
 0x1b4   : > { %v1205_v61 = vmul.f32 0.2, %v1103_v40  ;;  %v1207_v62 = vmul.f32 0.2, %v1174_v58  ;;  %vm1189_vm13 = vcmp.ge.f32.partialorder %v1103_v40, 0.0  ;;  %vm1191_vm14 = vcmp.ge.f32.partialorder %v1174_v58, 0.0 }
 0x1b5   : > { %3652 = vmatpush3.bf16.msra.mxu0 %v3040_v30  ;;  %3684 = vmatpush3.bf16.msra.mxu1 %v3056_v34  ;;  %v3091_v26 = vld [vmem:[%s4341_s21 + $0x3b0] sm:$0xff]   ;;  %v1204_v30 = vmul.f32 0.2, %v4579_v28  ;;  %v3092_v33 = vld [vmem:[%s4341_s21 + $0x3b8] sm:$0xff]   ;;  %v1206_v34 = vmul.f32 0.2, %v4582_v32 }
 0x1b6   : > { %3654 = vmatprep.subr.bf16.mxu0 %v3049_v35  ;;  %3686 = vmatprep.subr.bf16.mxu1 %v3065_v36  ;;  %v1221_v4 = vsel %vm1189_vm13, %v1103_v40, %v1205_v61  ;;  %v1223_v0 = vsel %vm1191_vm14, %v1174_v58, %v1207_v62 }
 0x1b7   : > { %v1220_v35 = vsel %vm1188_vm15, %v4579_v28, %v1204_v30  ;;  %v1222_v36 = vsel %vm1190_vm0, %v4582_v32, %v1206_v34 }
 0x1b9   : > { %3656 = vmatpush3.bf16.msra.mxu0 %v3041_v37  ;;  %3688 = vmatpush3.bf16.msra.mxu1 %v3057_v38 }
 0x1ba   : > { %3658 = vmatprep.subr.bf16.mxu0 %v3050_v47  ;;  %3690 = vmatprep.subr.bf16.mxu1 %v3066_v48 }
 0x1bd   : > { %3660 = vmatpush3.bf16.msra.mxu0 %v3042_v49  ;;  %3692 = vmatpush3.bf16.msra.mxu1 %v3058_v50 }
 0x1be   : > { %3662 = vmatprep.subr.bf16.mxu0 %v3051_v51  ;;  %3694 = vmatprep.subr.bf16.mxu1 %v3067_v52 }
 0x1c1   : > { %3664 = vmatpush3.bf16.msra.mxu0 %v3043_v41  ;;  %3696 = vmatpush3.bf16.msra.mxu1 %v3059_v55 }
 0x1c2   : > { %3666 = vmatprep.subr.bf16.mxu0 %v3052_v56  ;;  %3698 = vmatprep.subr.bf16.mxu1 %v3068_v57 }
 0x1c5   : > { %3668 = vmatpush3.bf16.msra.mxu0 %v3044_v39  ;;  %3700 = vmatpush3.bf16.msra.mxu1 %v3060_v46 }
 0x1c6   : > { %3702 = vmatprep.subr.bf16.mxu0 %v3077_v59  ;;  %3734 = vmatprep.subr.bf16.mxu1 %v3093_v43 }
 0x1c8   : > { %2082 = vmatmul.mubr.f32.vlgmr.msra.gmra.mrb[12].mxu0 %v1216_v1  ;;  %2152 = vmatmul.mubr.f32.vlgmr.msra.gmra.mrb[12].mxu1 %v1218_v42 }
 0x1c9   : > { %3704 = vmatpush3.bf16.msra.mxu0 %v3069_v63  ;;  %3736 = vmatpush3.bf16.msra.mxu1 %v3085_v45 }
 0x1ca   : > { %3706 = vmatprep.subr.bf16.mxu0 %v3078_v2  ;;  %3738 = vmatprep.subr.bf16.mxu1 %v3094_v3  ;;  %v1224_v2 = vld [vmem:[#allocation10] sm:$0xff] }
 0x1cb   : > { %2221 = vmatprep.mubr.f32.mxu0 %v1221_v4  ;;  %2291 = vmatprep.mubr.f32.mxu1 %v1223_v0 }
 0x1cd   : > { %3708 = vmatpush3.bf16.msra.mxu0 %v3070_v9  ;;  %3740 = vmatpush3.bf16.msra.mxu1 %v3086_v5  ;;  %v2454_v9 = vld [vmem:[%s4695_s4] ss:$0 sm:$0xff] (!%p2453_p0) }
 0x1ce   : > { %3710 = vmatprep.subr.bf16.mxu0 %v3079_v60  ;;  %3742 = vmatprep.subr.bf16.mxu1 %v3095_v7 }
 0x1d1   : > { %3712 = vmatpush3.bf16.msra.mxu0 %v3071_v8  ;;  %3744 = vmatpush3.bf16.msra.mxu1 %v3087_v11 }
 0x1d2   : > { %3714 = vmatprep.subr.bf16.mxu0 %v3080_v12  ;;  %3746 = vmatprep.subr.bf16.mxu1 %v3096_v13 }
 0x1d5   : > { %3716 = vmatpush3.bf16.msra.mxu0 %v3072_v14  ;;  %3748 = vmatpush3.bf16.msra.mxu1 %v3088_v15 }
 0x1d6   : > { %3718 = vmatprep.subr.bf16.mxu0 %v3081_v44  ;;  %3750 = vmatprep.subr.bf16.mxu1 %v3097_v16 }
 0x1d9   : > { %3720 = vmatpush3.bf16.msra.mxu0 %v3073_v17  ;;  %3752 = vmatpush3.bf16.msra.mxu1 %v3089_v18 }
 0x1da   : > { %3722 = vmatprep.subr.bf16.mxu0 %v3082_v19  ;;  %3754 = vmatprep.subr.bf16.mxu1 %v3098_v20 }
 0x1dd   : > { %3724 = vmatpush3.bf16.msra.mxu0 %v3074_v21  ;;  %3756 = vmatpush3.bf16.msra.mxu1 %v3090_v22 }
 0x1de   : > { %3726 = vmatprep.subr.bf16.mxu0 %v3083_v23  ;;  %3758 = vmatprep.subr.bf16.mxu1 %v3099_v24 }
 0x1e1   : > { %3728 = vmatpush3.bf16.msra.mxu0 %v3075_v25  ;;  %3760 = vmatpush3.bf16.msra.mxu1 %v3091_v26 }
 0x1e2   : > { %3730 = vmatprep.subr.bf16.mxu0 %v3084_v27  ;;  %3762 = vmatprep.subr.bf16.mxu1 %v3100_v29 }
 0x1e5   : > { %3732 = vmatpush3.bf16.msra.mxu0 %v3076_v31  ;;  %3764 = vmatpush3.bf16.msra.mxu1 %v3092_v33 }
 0x1e8   : > { %2222 = vmatmul.mubr.f32.vlgmr.msra.gmra.mrb[14].mxu0 %v1220_v35  ;;  %2292 = vmatmul.mubr.f32.vlgmr.msra.gmra.mrb[14].mxu1 %v1222_v36 }
 0x25b   : > { %v3133_v37 = vpop.f32.mrb[8].mxu0  ;;  %v3168_v38 = vpop.f32.mrb[8].mxu1 }
 0x25c   : > { %v3134_v47 = vpop.f32.mrb[9].mxu0  ;;  %v3169_v49 = vpop.f32.mrb[9].mxu1 }
 0x25d   : > { %v3135_v48 = vadd.f32 %v3134_v47, %v3133_v37  ;;  %v3170_v50 = vadd.f32 %v3169_v49, %v3168_v38 }
 0x25f   : > { %v1874_v51 = vadd.f32 %v3170_v50, %v3135_v48 }
 0x27b   : > { %v3203_v52 = vpop.f32.mrb[10].mxu0  ;;  %v3238_v53 = vpop.f32.mrb[10].mxu1 }
 0x27c   : > { %v3204_v54 = vpop.f32.mrb[11].mxu0  ;;  %v3239_v55 = vpop.f32.mrb[11].mxu1 }
 0x27d   : > { %v3205_v41 = vadd.f32 %v3204_v54, %v3203_v52  ;;  %v3240_v56 = vadd.f32 %v3239_v55, %v3238_v53 }
 0x27f   : > { %v1944_v57 = vadd.f32 %v3205_v41, %v1874_v51 }
 0x281   : > { %v2014_v40 = vadd.f32 %v3240_v56, %v1944_v57 }
 0x29b   : > { %v3273_v28 = vpop.f32.mrb[12].mxu0  ;;  %v3308_v58 = vpop.f32.mrb[12].mxu1 }
 0x29c   : > { %v3274_v6 = vpop.f32.mrb[13].mxu0  ;;  %v3309_v39 = vpop.f32.mrb[13].mxu1 }
 0x29d   : > { %v3275_v32 = vadd.f32 %v3274_v6, %v3273_v28  ;;  %v3310_v10 = vadd.f32 %v3309_v39, %v3308_v58 }
 0x29f   : > { %v2084_v46 = vadd.f32 %v3275_v32, %v2014_v40 }
 0x2a1   : > { %v2154_v59 = vadd.f32 %v3310_v10, %v2084_v46 }
 0x2bb   : > { %v3343_v43 = vpop.f32.mrb[14].mxu0  ;;  %v3378_v61 = vpop.f32.mrb[14].mxu1 }
 0x2bc   : > { %v3344_v62 = vpop.f32.mrb[15].mxu0  ;;  %v3379_v63 = vpop.f32.mrb[15].mxu1 }
 0x2bd   : > { %v3345_v42 = vadd.f32 %v3344_v62, %v3343_v43  ;;  %v3380_v1 = vadd.f32 %v3379_v63, %v3378_v61 }
 0x2bf   : > { %v2224_v45 = vadd.f32 %v3345_v42, %v2154_v59  ;;  %2302 = sbr.rel (%p2453_p0) target bundleno = 722 (0x2d2), region = 64 }
 0x2c1   : > { %v2294_v3 = vadd.f32 %v3380_v1, %v2224_v45 }
 0x2c3   : > { %v2297_v4 = vadd.f32 %v2294_v3, %v1224_v2 }
 0x2c5   : > { %2298 = vst [vmem:[#allocation10] sm:$0xff] %v2297_v4 }
 0x2cc   : > { %v2303_v0 = vld [vmem:[#allocation10] sm:$0xff] }
 0x2cd   : > { %v2311_v5 = vadd.f32 %v2454_v9, %v2303_v0 }
 0x2cf   : > { %v2312_v60 = vmax.f32 %v2311_v5, 0.0 }
 0x2d1   : > { %2313 = vst [vmem:[#allocation10] sm:$0xff] %v2312_v60 }
 0x2d2 PF: > { %p3860_p4 = scmp.eq.s32.totalorder %s4217_s12, 1  ;;  %s4104_s26 = smov [#allocation10]  }
 0x2d3   : > { %s2321_s29 = sshll.u32 %s4104_s26, 4  ;;  %s2322_s29 = int_to_ptr.vmem [resolvable:$true] %s2321_s29 }
 0x2d4   : > { %s4020_s23 = scalar_lea.vmem %s2322_s29, 128  ;;  %p4027_p7 = scmp.lt.s32.totalorder %s2322_s29, %s2322_s29 }
 0x2d5   : > { %p4021_p8 = scmp.ne.s32.totalorder %s2322_s29, %s4020_s23  ;;  %p4028_p12 = scmp.lt.s32.totalorder %s4020_s23, %s4020_s23 }
 0x2d7   : > { %p4022_p2 = pnand %p4021_p8, %p3860_p4  ;;  %p4029_p3 = por %p4028_p12, %p4027_p7 }
 0x2d9   : > { %p4023_p5 = pneg %p4022_p2 }
 0x2db   : > { %p4030_p9 = pnand %p4029_p3, %p4023_p5 }
 0x2dd   : > { %4033 = shalt.err (!%p4030_p9)
}
 0x2de   : > { %s4034_s1 = scalar_lea.hbm %s4696_s5, 128 }
 0x2df   : > { %p4035_p10 = scmp.ne.s32.totalorder %s4696_s5, %s4034_s1  ;;  %p4040_p13 = scmp.lt.u32.totalorder %s4034_s1, %s4696_s5 }
 0x2e1   : > { %p4036_p1 = pnand %p4035_p10, %p3860_p4 }
 0x2e3   : > { %p4037_p6 = pneg %p4036_p1 }
 0x2e5   : > { %p4042_p11 = pnand %p4040_p13, %p4037_p6 }
 0x2e7   : > { %4045 = shalt.err (!%p4042_p11)
}
 0x2e8   : > { %3840 = dma.vmem_to_hbm [thread:$0]  (%p3860_p4), %s2322_s29, 128, %s4696_s5, [#allocation4]  }
 0x2e9   : > { %4075 = dma.done.wait (%p3860_p4), [#allocation4], 128  }
 0x2ea   : > { %4077 = vsyncadd (%p3860_p4), [#allocation4], 4294967168 }
 0x2eb PF: > { %p20_p0 = scmp.ge.s32.totalorder %s4156_s22, 4   ;;  %s4720_s18 = smov %s4084_s19 }
 0x2ec   : > { %s4721_s19 = smov %s4088_s20  ;;  %s4722_s20 = smov %s4166_s25 }
 0x2ed   : > { %s4723_s21 = smov %s4156_s22  ;;  %22 = sbr.rel (!%p20_p0) target bundleno = 9 (0x9), region = 114 }
 0x2f4   :  { %2334 = vsyncpa [#allocation3], 1 }
 0x2f5   :  { %2336 = vsyncpa [#allocation3 + $0x1], 1 }
 0x2f6   :  { %2337 = vsyncpa [#allocation6], 1 }
 0x2f7   :  { %2339 = vsyncpa [#allocation6 + $0x1], 1 }
 0x2f8   :  { %2340 = vsyncpa [#allocation9], 1 }
 0x2f9   :  { %2342 = vsyncpa [#allocation9 + $0x1], 1 }
 0x2fa   :  { %2343 = vsyncpa [#allocation4], 1 }
 0x2fb   :  { %2345 = vsyncpa [#allocation4 + $0x1], 1 }

</bundles_post_ra>
